<compile_context>
chip_gen: v5e
topology: v5e:2x2
jax: 0.10.0
libtpu: 0.0.40
codegen_flags: <defaults>
</compile_context>

<pallas_src>
import functools

import jax
import jax.numpy as jnp
from jax import lax
from jax.experimental import pallas as pl
from jax.experimental.pallas import tpu as pltpu

HIDDEN = 64      # hidden size (matches the PyTorch module)
OUTPUT = 3


def _lstm_kernel(x_ref, wih_ref, whh_ref, b_ref, h0_ref, c0_ref,
                 hn_ref, cn_ref, *, seq_len, batch, hidden):
    """Single-invocation LSTM over a fully VMEM-resident input.

    x_ref:   (T*B, D)    time-major input flattened to one 2-D slab
    wih_ref: (D, 4*H)    gate order [i, f, o, g]
    whh_ref: (H, 4*H)
    b_ref:   (T*B, 4*H)  combined bias, pre-broadcast over T*B rows
    h0/c0:   (B, H)
    hn/cn:   (B, H)
    """
    H = hidden
    B = batch

    # --- hoisted off the serial chain: input projection for ALL timesteps ---
    gates_x = (jnp.dot(x_ref[...], wih_ref[...],
                       preferred_element_type=jnp.float32)
               + b_ref[...])                                   # (T*B, 4H)

    w_hh = whh_ref[...]                                        # loop-invariant

    h = h0_ref[...]                                            # (B, H)
    c = c0_ref[...]

    # T is small (8): fully static unrolled loop.  For long T use
    # lax.fori_loop(..., unroll=4..8) or a grid axis instead.
    for t in range(seq_len):
        gates = gates_x[t * B:(t + 1) * B, :] + jnp.dot(
            h, w_hh, preferred_element_type=jnp.float32)       # (B, 4H)

        # One sigmoid over the contiguous [i, f, o] block, one tanh over g.
        sig = jax.nn.sigmoid(gates[:, :3 * H])
        i_g = sig[:, 0 * H:1 * H]
        f_g = sig[:, 1 * H:2 * H]
        o_g = sig[:, 2 * H:3 * H]
        g_g = jnp.tanh(gates[:, 3 * H:4 * H])

        c = f_g * c + i_g * g_g
        h = o_g * jnp.tanh(c)

    hn_ref[...] = h
    cn_ref[...] = c


def _reorder_gates(w, h):
    """PyTorch gate order [i, f, g, o] -> [i, f, o, g] along axis 0."""
    i_w, f_w, g_w, o_w = (w[k * h:(k + 1) * h] for k in range(4))
    return jnp.concatenate([i_w, f_w, o_w, g_w], axis=0)


def lstm_forward(x, h0, c0, params):
    """x: (B, T, D) f32; h0, c0: (1, B, H) f32.  Returns (out, h_n, c_n)."""
    B, T, D = x.shape
    H = HIDDEN

    # Weight prep: reorder gates to [i, f, o, g]; no padding (4H = 256 lanes).
    wih = _reorder_gates(params["w_ih"], H).T                  # (D, 4H)
    whh = _reorder_gates(params["w_hh"], H).T                  # (H, 4H)
    bias = _reorder_gates(params["b_ih"] + params["b_hh"], H)  # (4H,)
    bias_b = jnp.broadcast_to(bias.reshape(1, 4 * H), (T * B, 4 * H))

    # Time-major, flattened: row t*B + b is (timestep t, batch b).
    x_2d = jnp.transpose(x, (1, 0, 2)).reshape(T * B, D)

    kernel = functools.partial(_lstm_kernel, seq_len=T, batch=B, hidden=H)

    vmem_spec = lambda: pl.BlockSpec(memory_space=pltpu.MemorySpace.VMEM)

    h_n, c_n = pl.pallas_call(
        kernel,
        out_shape=(jax.ShapeDtypeStruct((B, H), jnp.float32),
                   jax.ShapeDtypeStruct((B, H), jnp.float32)),
        in_specs=[vmem_spec() for _ in range(6)],
        out_specs=(vmem_spec(), vmem_spec()),
    )(x_2d, wih, whh, bias_b, h0[0], c0[0])

    # Tiny Linear(64 -> 3) on the last hidden state, done in the wrapper.
    out = (jnp.dot(h_n, params["w_lin"].T, precision=lax.Precision.HIGHEST)
           + params["b_lin"].reshape(1, OUTPUT))
    return out, h_n[None], c_n[None]


def init_params(key, input_size):
    """Deterministic synthetic parameters, PyTorch-style uniform init."""
    H = HIDDEN
    k = 1.0 / jnp.sqrt(jnp.float32(H))
    keys = jax.random.split(key, 6)
    u = lambda kk, shape: jax.random.uniform(kk, shape, jnp.float32, -k, k)
    return {
        "w_ih": u(keys[0], (4 * H, input_size)),
        "w_hh": u(keys[1], (4 * H, H)),
        "b_ih": u(keys[2], (4 * H,)),
        "b_hh": u(keys[3], (4 * H,)),
        "w_lin": u(keys[4], (OUTPUT, H)),
        "b_lin": u(keys[5], (OUTPUT,)),
    }


def reference_forward(x, h0, c0, params):
    """Pure-JAX reference of the same LSTM forward (PyTorch gate order)."""
    B, T, D = x.shape
    H = HIDDEN
    h = h0[0]
    c = c0[0]
    bias = params["b_ih"] + params["b_hh"]
    hi = lax.Precision.HIGHEST
    for t in range(T):
        gates = (jnp.dot(x[:, t, :], params["w_ih"].T, precision=hi)
                 + jnp.dot(h, params["w_hh"].T, precision=hi) + bias)
        i_g = jax.nn.sigmoid(gates[:, 0 * H:1 * H])
        f_g = jax.nn.sigmoid(gates[:, 1 * H:2 * H])
        g_g = jnp.tanh(gates[:, 2 * H:3 * H])
        o_g = jax.nn.sigmoid(gates[:, 3 * H:4 * H])
        c = f_g * c + i_g * g_g
        h = o_g * jnp.tanh(c)
    out = (jnp.dot(h, params["w_lin"].T, precision=hi)
           + params["b_lin"].reshape(1, OUTPUT))
    return out, h[None], c[None]


if __name__ == "__main__":
    B, T, D = 2, 8, 16   # batch, seq_len, input_size

    key = jax.random.PRNGKey(0)
    kx, kp = jax.random.split(key)
    x = jax.random.normal(kx, (B, T, D), jnp.float32)
    h0 = jnp.zeros((1, B, HIDDEN), jnp.float32)
    c0 = jnp.zeros((1, B, HIDDEN), jnp.float32)
    params = init_params(kp, D)

    out, h_n, c_n = lstm_forward(x, h0, c0, params)
    jax.block_until_ready((out, h_n, c_n))

    ref_out, ref_h, ref_c = reference_forward(x, h0, c0, params)
    assert out.shape == (B, OUTPUT)
    assert h_n.shape == (1, B, HIDDEN) and c_n.shape == (1, B, HIDDEN)
    assert jnp.allclose(out, ref_out, atol=1e-5), jnp.max(jnp.abs(out - ref_out))
    assert jnp.allclose(h_n, ref_h, atol=1e-5), jnp.max(jnp.abs(h_n - ref_h))
    assert jnp.allclose(c_n, ref_c, atol=1e-5), jnp.max(jnp.abs(c_n - ref_c))

    print("KERNEL_OK")
</pallas_src>

<mosaic_0001>
module attributes {stable_mosaic.version = 11 : i64} {
  func.func @_lstm_kernel(%arg0: memref<16x16xf32, #tpu.memory_space<vmem>>, %arg1: memref<16x256xf32, #tpu.memory_space<vmem>>, %arg2: memref<64x256xf32, #tpu.memory_space<vmem>>, %arg3: memref<16x256xf32, #tpu.memory_space<vmem>>, %arg4: memref<2x64xf32, #tpu.memory_space<vmem>>, %arg5: memref<2x64xf32, #tpu.memory_space<vmem>>, %arg6: memref<2x64xf32, #tpu.memory_space<vmem>>, %arg7: memref<2x64xf32, #tpu.memory_space<vmem>>) attributes {dimension_semantics = [], scalar_prefetch = 0 : i64, scratch_operands = 0 : i64, tpu.core_type = #tpu.core_type<tc>} {
    %c0 = arith.constant 0 : index
    %c0_0 = arith.constant 0 : index
    %0 = vector.load %arg0[%c0, %c0_0] : memref<16x16xf32, #tpu.memory_space<vmem>>, vector<16x16xf32>
    %c0_1 = arith.constant 0 : index
    %c0_2 = arith.constant 0 : index
    %1 = vector.load %arg1[%c0_1, %c0_2] : memref<16x256xf32, #tpu.memory_space<vmem>>, vector<16x256xf32>
    %cst = arith.constant dense<0.000000e+00> : vector<16x256xf32>
    %2 = tpu.matmul %0, %1, %cst {dimension_numbers = #tpu.dot_dimension_numbers<[1], [0], [0], [1], [0, 0, 1, 1], [], []>} : vector<16x16xf32>, vector<16x256xf32>, vector<16x256xf32> -> vector<16x256xf32>
    %c0_3 = arith.constant 0 : index
    %c0_4 = arith.constant 0 : index
    %3 = vector.load %arg3[%c0_3, %c0_4] : memref<16x256xf32, #tpu.memory_space<vmem>>, vector<16x256xf32>
    %4 = arith.addf %2, %3 : vector<16x256xf32>
    %c0_5 = arith.constant 0 : index
    %c0_6 = arith.constant 0 : index
    %5 = vector.load %arg2[%c0_5, %c0_6] : memref<64x256xf32, #tpu.memory_space<vmem>>, vector<64x256xf32>
    %c0_7 = arith.constant 0 : index
    %c0_8 = arith.constant 0 : index
    %6 = vector.load %arg4[%c0_7, %c0_8] : memref<2x64xf32, #tpu.memory_space<vmem>>, vector<2x64xf32>
    %c0_9 = arith.constant 0 : index
    %c0_10 = arith.constant 0 : index
    %7 = vector.load %arg5[%c0_9, %c0_10] : memref<2x64xf32, #tpu.memory_space<vmem>>, vector<2x64xf32>
    %8 = vector.extract_strided_slice %4 {offsets = [0, 0], sizes = [2, 256], strides = [1, 1]} : vector<16x256xf32> to vector<2x256xf32>
    %cst_11 = arith.constant dense<0.000000e+00> : vector<2x256xf32>
    %9 = tpu.matmul %6, %5, %cst_11 {dimension_numbers = #tpu.dot_dimension_numbers<[1], [0], [0], [1], [0, 0, 1, 1], [], []>} : vector<2x64xf32>, vector<64x256xf32>, vector<2x256xf32> -> vector<2x256xf32>
    %10 = arith.addf %8, %9 : vector<2x256xf32>
    %11 = vector.extract_strided_slice %10 {offsets = [0, 0], sizes = [2, 192], strides = [1, 1]} : vector<2x256xf32> to vector<2x192xf32>
    %12 = arith.negf %11 : vector<2x192xf32>
    %13 = math.exp %12 : vector<2x192xf32>
    %cst_12 = arith.constant 1.000000e+00 : f32
    %14 = vector.broadcast %cst_12 : f32 to vector<2x192xf32>
    %15 = arith.addf %14, %13 : vector<2x192xf32>
    %16 = arith.divf %14, %15 : vector<2x192xf32>
    %17 = vector.extract_strided_slice %16 {offsets = [0, 0], sizes = [2, 64], strides = [1, 1]} : vector<2x192xf32> to vector<2x64xf32>
    %18 = vector.extract_strided_slice %16 {offsets = [0, 64], sizes = [2, 64], strides = [1, 1]} : vector<2x192xf32> to vector<2x64xf32>
    %19 = vector.extract_strided_slice %16 {offsets = [0, 128], sizes = [2, 64], strides = [1, 1]} : vector<2x192xf32> to vector<2x64xf32>
    %20 = vector.extract_strided_slice %10 {offsets = [0, 192], sizes = [2, 64], strides = [1, 1]} : vector<2x256xf32> to vector<2x64xf32>
    %21 = math.tanh %20 : vector<2x64xf32>
    %22 = arith.mulf %18, %7 : vector<2x64xf32>
    %23 = arith.mulf %17, %21 : vector<2x64xf32>
    %24 = arith.addf %22, %23 : vector<2x64xf32>
    %25 = math.tanh %24 : vector<2x64xf32>
    %26 = arith.mulf %19, %25 : vector<2x64xf32>
    %27 = vector.extract_strided_slice %4 {offsets = [2, 0], sizes = [2, 256], strides = [1, 1]} : vector<16x256xf32> to vector<2x256xf32>
    %cst_13 = arith.constant dense<0.000000e+00> : vector<2x256xf32>
    %28 = tpu.matmul %26, %5, %cst_13 {dimension_numbers = #tpu.dot_dimension_numbers<[1], [0], [0], [1], [0, 0, 1, 1], [], []>} : vector<2x64xf32>, vector<64x256xf32>, vector<2x256xf32> -> vector<2x256xf32>
    %29 = arith.addf %27, %28 : vector<2x256xf32>
    %30 = vector.extract_strided_slice %29 {offsets = [0, 0], sizes = [2, 192], strides = [1, 1]} : vector<2x256xf32> to vector<2x192xf32>
    %31 = arith.negf %30 : vector<2x192xf32>
    %32 = math.exp %31 : vector<2x192xf32>
    %cst_14 = arith.constant 1.000000e+00 : f32
    %33 = vector.broadcast %cst_14 : f32 to vector<2x192xf32>
    %34 = arith.addf %33, %32 : vector<2x192xf32>
    %35 = arith.divf %33, %34 : vector<2x192xf32>
    %36 = vector.extract_strided_slice %35 {offsets = [0, 0], sizes = [2, 64], strides = [1, 1]} : vector<2x192xf32> to vector<2x64xf32>
    %37 = vector.extract_strided_slice %35 {offsets = [0, 64], sizes = [2, 64], strides = [1, 1]} : vector<2x192xf32> to vector<2x64xf32>
    %38 = vector.extract_strided_slice %35 {offsets = [0, 128], sizes = [2, 64], strides = [1, 1]} : vector<2x192xf32> to vector<2x64xf32>
    %39 = vector.extract_strided_slice %29 {offsets = [0, 192], sizes = [2, 64], strides = [1, 1]} : vector<2x256xf32> to vector<2x64xf32>
    %40 = math.tanh %39 : vector<2x64xf32>
    %41 = arith.mulf %37, %24 : vector<2x64xf32>
    %42 = arith.mulf %36, %40 : vector<2x64xf32>
    %43 = arith.addf %41, %42 : vector<2x64xf32>
    %44 = math.tanh %43 : vector<2x64xf32>
    %45 = arith.mulf %38, %44 : vector<2x64xf32>
    %46 = vector.extract_strided_slice %4 {offsets = [4, 0], sizes = [2, 256], strides = [1, 1]} : vector<16x256xf32> to vector<2x256xf32>
    %cst_15 = arith.constant dense<0.000000e+00> : vector<2x256xf32>
    %47 = tpu.matmul %45, %5, %cst_15 {dimension_numbers = #tpu.dot_dimension_numbers<[1], [0], [0], [1], [0, 0, 1, 1], [], []>} : vector<2x64xf32>, vector<64x256xf32>, vector<2x256xf32> -> vector<2x256xf32>
    %48 = arith.addf %46, %47 : vector<2x256xf32>
    %49 = vector.extract_strided_slice %48 {offsets = [0, 0], sizes = [2, 192], strides = [1, 1]} : vector<2x256xf32> to vector<2x192xf32>
    %50 = arith.negf %49 : vector<2x192xf32>
    %51 = math.exp %50 : vector<2x192xf32>
    %cst_16 = arith.constant 1.000000e+00 : f32
    %52 = vector.broadcast %cst_16 : f32 to vector<2x192xf32>
    %53 = arith.addf %52, %51 : vector<2x192xf32>
    %54 = arith.divf %52, %53 : vector<2x192xf32>
    %55 = vector.extract_strided_slice %54 {offsets = [0, 0], sizes = [2, 64], strides = [1, 1]} : vector<2x192xf32> to vector<2x64xf32>
    %56 = vector.extract_strided_slice %54 {offsets = [0, 64], sizes = [2, 64], strides = [1, 1]} : vector<2x192xf32> to vector<2x64xf32>
    %57 = vector.extract_strided_slice %54 {offsets = [0, 128], sizes = [2, 64], strides = [1, 1]} : vector<2x192xf32> to vector<2x64xf32>
    %58 = vector.extract_strided_slice %48 {offsets = [0, 192], sizes = [2, 64], strides = [1, 1]} : vector<2x256xf32> to vector<2x64xf32>
    %59 = math.tanh %58 : vector<2x64xf32>
    %60 = arith.mulf %56, %43 : vector<2x64xf32>
    %61 = arith.mulf %55, %59 : vector<2x64xf32>
    %62 = arith.addf %60, %61 : vector<2x64xf32>
    %63 = math.tanh %62 : vector<2x64xf32>
    %64 = arith.mulf %57, %63 : vector<2x64xf32>
    %65 = vector.extract_strided_slice %4 {offsets = [6, 0], sizes = [2, 256], strides = [1, 1]} : vector<16x256xf32> to vector<2x256xf32>
    %cst_17 = arith.constant dense<0.000000e+00> : vector<2x256xf32>
    %66 = tpu.matmul %64, %5, %cst_17 {dimension_numbers = #tpu.dot_dimension_numbers<[1], [0], [0], [1], [0, 0, 1, 1], [], []>} : vector<2x64xf32>, vector<64x256xf32>, vector<2x256xf32> -> vector<2x256xf32>
    %67 = arith.addf %65, %66 : vector<2x256xf32>
    %68 = vector.extract_strided_slice %67 {offsets = [0, 0], sizes = [2, 192], strides = [1, 1]} : vector<2x256xf32> to vector<2x192xf32>
    %69 = arith.negf %68 : vector<2x192xf32>
    %70 = math.exp %69 : vector<2x192xf32>
    %cst_18 = arith.constant 1.000000e+00 : f32
    %71 = vector.broadcast %cst_18 : f32 to vector<2x192xf32>
    %72 = arith.addf %71, %70 : vector<2x192xf32>
    %73 = arith.divf %71, %72 : vector<2x192xf32>
    %74 = vector.extract_strided_slice %73 {offsets = [0, 0], sizes = [2, 64], strides = [1, 1]} : vector<2x192xf32> to vector<2x64xf32>
    %75 = vector.extract_strided_slice %73 {offsets = [0, 64], sizes = [2, 64], strides = [1, 1]} : vector<2x192xf32> to vector<2x64xf32>
    %76 = vector.extract_strided_slice %73 {offsets = [0, 128], sizes = [2, 64], strides = [1, 1]} : vector<2x192xf32> to vector<2x64xf32>
    %77 = vector.extract_strided_slice %67 {offsets = [0, 192], sizes = [2, 64], strides = [1, 1]} : vector<2x256xf32> to vector<2x64xf32>
    %78 = math.tanh %77 : vector<2x64xf32>
    %79 = arith.mulf %75, %62 : vector<2x64xf32>
    %80 = arith.mulf %74, %78 : vector<2x64xf32>
    %81 = arith.addf %79, %80 : vector<2x64xf32>
    %82 = math.tanh %81 : vector<2x64xf32>
    %83 = arith.mulf %76, %82 : vector<2x64xf32>
    %84 = vector.extract_strided_slice %4 {offsets = [8, 0], sizes = [2, 256], strides = [1, 1]} : vector<16x256xf32> to vector<2x256xf32>
    %cst_19 = arith.constant dense<0.000000e+00> : vector<2x256xf32>
    %85 = tpu.matmul %83, %5, %cst_19 {dimension_numbers = #tpu.dot_dimension_numbers<[1], [0], [0], [1], [0, 0, 1, 1], [], []>} : vector<2x64xf32>, vector<64x256xf32>, vector<2x256xf32> -> vector<2x256xf32>
    %86 = arith.addf %84, %85 : vector<2x256xf32>
    %87 = vector.extract_strided_slice %86 {offsets = [0, 0], sizes = [2, 192], strides = [1, 1]} : vector<2x256xf32> to vector<2x192xf32>
    %88 = arith.negf %87 : vector<2x192xf32>
    %89 = math.exp %88 : vector<2x192xf32>
    %cst_20 = arith.constant 1.000000e+00 : f32
    %90 = vector.broadcast %cst_20 : f32 to vector<2x192xf32>
    %91 = arith.addf %90, %89 : vector<2x192xf32>
    %92 = arith.divf %90, %91 : vector<2x192xf32>
    %93 = vector.extract_strided_slice %92 {offsets = [0, 0], sizes = [2, 64], strides = [1, 1]} : vector<2x192xf32> to vector<2x64xf32>
    %94 = vector.extract_strided_slice %92 {offsets = [0, 64], sizes = [2, 64], strides = [1, 1]} : vector<2x192xf32> to vector<2x64xf32>
    %95 = vector.extract_strided_slice %92 {offsets = [0, 128], sizes = [2, 64], strides = [1, 1]} : vector<2x192xf32> to vector<2x64xf32>
    %96 = vector.extract_strided_slice %86 {offsets = [0, 192], sizes = [2, 64], strides = [1, 1]} : vector<2x256xf32> to vector<2x64xf32>
    %97 = math.tanh %96 : vector<2x64xf32>
    %98 = arith.mulf %94, %81 : vector<2x64xf32>
    %99 = arith.mulf %93, %97 : vector<2x64xf32>
    %100 = arith.addf %98, %99 : vector<2x64xf32>
    %101 = math.tanh %100 : vector<2x64xf32>
    %102 = arith.mulf %95, %101 : vector<2x64xf32>
    %103 = vector.extract_strided_slice %4 {offsets = [10, 0], sizes = [2, 256], strides = [1, 1]} : vector<16x256xf32> to vector<2x256xf32>
    %cst_21 = arith.constant dense<0.000000e+00> : vector<2x256xf32>
    %104 = tpu.matmul %102, %5, %cst_21 {dimension_numbers = #tpu.dot_dimension_numbers<[1], [0], [0], [1], [0, 0, 1, 1], [], []>} : vector<2x64xf32>, vector<64x256xf32>, vector<2x256xf32> -> vector<2x256xf32>
    %105 = arith.addf %103, %104 : vector<2x256xf32>
    %106 = vector.extract_strided_slice %105 {offsets = [0, 0], sizes = [2, 192], strides = [1, 1]} : vector<2x256xf32> to vector<2x192xf32>
    %107 = arith.negf %106 : vector<2x192xf32>
    %108 = math.exp %107 : vector<2x192xf32>
    %cst_22 = arith.constant 1.000000e+00 : f32
    %109 = vector.broadcast %cst_22 : f32 to vector<2x192xf32>
    %110 = arith.addf %109, %108 : vector<2x192xf32>
    %111 = arith.divf %109, %110 : vector<2x192xf32>
    %112 = vector.extract_strided_slice %111 {offsets = [0, 0], sizes = [2, 64], strides = [1, 1]} : vector<2x192xf32> to vector<2x64xf32>
    %113 = vector.extract_strided_slice %111 {offsets = [0, 64], sizes = [2, 64], strides = [1, 1]} : vector<2x192xf32> to vector<2x64xf32>
    %114 = vector.extract_strided_slice %111 {offsets = [0, 128], sizes = [2, 64], strides = [1, 1]} : vector<2x192xf32> to vector<2x64xf32>
    %115 = vector.extract_strided_slice %105 {offsets = [0, 192], sizes = [2, 64], strides = [1, 1]} : vector<2x256xf32> to vector<2x64xf32>
    %116 = math.tanh %115 : vector<2x64xf32>
    %117 = arith.mulf %113, %100 : vector<2x64xf32>
    %118 = arith.mulf %112, %116 : vector<2x64xf32>
    %119 = arith.addf %117, %118 : vector<2x64xf32>
    %120 = math.tanh %119 : vector<2x64xf32>
    %121 = arith.mulf %114, %120 : vector<2x64xf32>
    %122 = vector.extract_strided_slice %4 {offsets = [12, 0], sizes = [2, 256], strides = [1, 1]} : vector<16x256xf32> to vector<2x256xf32>
    %cst_23 = arith.constant dense<0.000000e+00> : vector<2x256xf32>
    %123 = tpu.matmul %121, %5, %cst_23 {dimension_numbers = #tpu.dot_dimension_numbers<[1], [0], [0], [1], [0, 0, 1, 1], [], []>} : vector<2x64xf32>, vector<64x256xf32>, vector<2x256xf32> -> vector<2x256xf32>
    %124 = arith.addf %122, %123 : vector<2x256xf32>
    %125 = vector.extract_strided_slice %124 {offsets = [0, 0], sizes = [2, 192], strides = [1, 1]} : vector<2x256xf32> to vector<2x192xf32>
    %126 = arith.negf %125 : vector<2x192xf32>
    %127 = math.exp %126 : vector<2x192xf32>
    %cst_24 = arith.constant 1.000000e+00 : f32
    %128 = vector.broadcast %cst_24 : f32 to vector<2x192xf32>
    %129 = arith.addf %128, %127 : vector<2x192xf32>
    %130 = arith.divf %128, %129 : vector<2x192xf32>
    %131 = vector.extract_strided_slice %130 {offsets = [0, 0], sizes = [2, 64], strides = [1, 1]} : vector<2x192xf32> to vector<2x64xf32>
    %132 = vector.extract_strided_slice %130 {offsets = [0, 64], sizes = [2, 64], strides = [1, 1]} : vector<2x192xf32> to vector<2x64xf32>
    %133 = vector.extract_strided_slice %130 {offsets = [0, 128], sizes = [2, 64], strides = [1, 1]} : vector<2x192xf32> to vector<2x64xf32>
    %134 = vector.extract_strided_slice %124 {offsets = [0, 192], sizes = [2, 64], strides = [1, 1]} : vector<2x256xf32> to vector<2x64xf32>
    %135 = math.tanh %134 : vector<2x64xf32>
    %136 = arith.mulf %132, %119 : vector<2x64xf32>
    %137 = arith.mulf %131, %135 : vector<2x64xf32>
    %138 = arith.addf %136, %137 : vector<2x64xf32>
    %139 = math.tanh %138 : vector<2x64xf32>
    %140 = arith.mulf %133, %139 : vector<2x64xf32>
    %141 = vector.extract_strided_slice %4 {offsets = [14, 0], sizes = [2, 256], strides = [1, 1]} : vector<16x256xf32> to vector<2x256xf32>
    %cst_25 = arith.constant dense<0.000000e+00> : vector<2x256xf32>
    %142 = tpu.matmul %140, %5, %cst_25 {dimension_numbers = #tpu.dot_dimension_numbers<[1], [0], [0], [1], [0, 0, 1, 1], [], []>} : vector<2x64xf32>, vector<64x256xf32>, vector<2x256xf32> -> vector<2x256xf32>
    %143 = arith.addf %141, %142 : vector<2x256xf32>
    %144 = vector.extract_strided_slice %143 {offsets = [0, 0], sizes = [2, 192], strides = [1, 1]} : vector<2x256xf32> to vector<2x192xf32>
    %145 = arith.negf %144 : vector<2x192xf32>
    %146 = math.exp %145 : vector<2x192xf32>
    %cst_26 = arith.constant 1.000000e+00 : f32
    %147 = vector.broadcast %cst_26 : f32 to vector<2x192xf32>
    %148 = arith.addf %147, %146 : vector<2x192xf32>
    %149 = arith.divf %147, %148 : vector<2x192xf32>
    %150 = vector.extract_strided_slice %149 {offsets = [0, 0], sizes = [2, 64], strides = [1, 1]} : vector<2x192xf32> to vector<2x64xf32>
    %151 = vector.extract_strided_slice %149 {offsets = [0, 64], sizes = [2, 64], strides = [1, 1]} : vector<2x192xf32> to vector<2x64xf32>
    %152 = vector.extract_strided_slice %149 {offsets = [0, 128], sizes = [2, 64], strides = [1, 1]} : vector<2x192xf32> to vector<2x64xf32>
    %153 = vector.extract_strided_slice %143 {offsets = [0, 192], sizes = [2, 64], strides = [1, 1]} : vector<2x256xf32> to vector<2x64xf32>
    %154 = math.tanh %153 : vector<2x64xf32>
    %155 = arith.mulf %151, %138 : vector<2x64xf32>
    %156 = arith.mulf %150, %154 : vector<2x64xf32>
    %157 = arith.addf %155, %156 : vector<2x64xf32>
    %158 = math.tanh %157 : vector<2x64xf32>
    %159 = arith.mulf %152, %158 : vector<2x64xf32>
    %c0_27 = arith.constant 0 : index
    %c0_28 = arith.constant 0 : index
    %160 = vector.load %arg6[%c0_27, %c0_28] : memref<2x64xf32, #tpu.memory_space<vmem>>, vector<2x64xf32>
    tpu.vector_store %arg6[%c0_27, %c0_28], %159 {strides = array<i32>} : memref<2x64xf32, #tpu.memory_space<vmem>>, vector<2x64xf32>,
    %c0_29 = arith.constant 0 : index
    %c0_30 = arith.constant 0 : index
    %161 = vector.load %arg7[%c0_29, %c0_30] : memref<2x64xf32, #tpu.memory_space<vmem>>, vector<2x64xf32>
    tpu.vector_store %arg7[%c0_29, %c0_30], %157 {strides = array<i32>} : memref<2x64xf32, #tpu.memory_space<vmem>>, vector<2x64xf32>,
    return
  }
}

</mosaic_0001>

<bundles_post_ra>
// kernel: tpu_custom_call.1
= control target key start
LH: loop header
LB: loop body
LE: loop exit
PB: predicated region body
PF: predicated region fallthrough
CT: control target
= control target key end

     0   :  { %13 = vsyncpa [#allocation3], 0  ;;  %s1714_s0 = inlined_call_operand.hbm [shape: f32[16,16], index: 0, kind: input, shape index: {}]   ;;  %s1715_s1 = inlined_call_operand.hbm [shape: f32[16,256], index: 1, kind: input, shape index: {}]   ;;  %s1716_s2 = inlined_call_operand.hbm [shape: f32[64,256], index: 2, kind: input, shape index: {}]   ;;  %s1717_s3 = inlined_call_operand.hbm [shape: f32[16,256], index: 3, kind: input, shape index: {}]   ;;  %s1718_s4 = inlined_call_operand.vmem [shape: f32[2,64], index: 4, kind: input, shape index: {}]   ;;  %s1719_s5 = inlined_call_operand.vmem [shape: f32[2,64], index: 5, kind: input, shape index: {}]   ;;  %s1720_s6 = inlined_call_operand.hbm [shape: f32[2,64], index: 6, kind: output, shape index: {0}]   ;;  %s1721_s7 = inlined_call_operand.hbm [shape: f32[2,64], index: 7, kind: output, shape index: {1}]  }
   0x1   :  { %14 = vsyncpa [#allocation6], 0 }
   0x2   :  { %15 = vsyncpa [#allocation9], 0 }
   0x3   :  { %16 = vsyncpa [#allocation4], 0  ;;  %s35_s26 = sshll.u32 %s1715_s1, 4  ;;  %s36_s26 = int_to_ptr.hbm [resolvable:$true] %s35_s26 }
   0x4   :  { %17 = vsyncpa [#allocation12], 0  ;;  %s1385_s27 = smov [#allocation5]   ;;  %s22_s8 = sshll.u32 %s1714_s0, 4  ;;  %s23_s8 = int_to_ptr.hbm [resolvable:$true] %s22_s8 }
   0x5   :  { %s37_s28 = sshll.u32 %s1385_s27, 4  ;;  %s1386_s9 = smov 256   ;;  %s38_s28 = int_to_ptr.vmem [resolvable:$true] %s37_s28 }
   0x6   :  { %s1387_s10 = smov 16   ;;  %s1388_s11 = smov [#allocation2]  }
   0x7   :  { %43 = dma.hbm_to_vmem [thread:$0]  %s36_s26, 512, %s38_s28, [#allocation6], %s1386_s9, %s1386_s9, %s1387_s10  }
   0x8   :  { %s24_s12 = sshll.u32 %s1388_s11, 4  ;;  %s1389_s13 = smov 128   ;;  %s25_s12 = int_to_ptr.vmem [resolvable:$true] %s24_s12 }
   0x9   :  { %s1390_s14 = smov 8   ;;  %s48_s16 = sshll.u32 %s1716_s2, 4  ;;  %s49_s16 = int_to_ptr.hbm [resolvable:$true] %s48_s16 }
   0xa   :  { %30 = dma.hbm_to_vmem [thread:$0]  %s23_s8, 256, %s25_s12, [#allocation3], %s1389_s13, %s1389_s13, %s1390_s14  }
   0xb   :  { %s1391_s17 = smov [#allocation7]   ;;  %s61_s20 = sshll.u32 %s1717_s3, 4  ;;  %s62_s20 = int_to_ptr.hbm [resolvable:$true] %s61_s20 }
   0xc   :  { %s50_s18 = sshll.u32 %s1391_s17, 4  ;;  %s1392_s21 = smov [#allocation8]   ;;  %s51_s18 = int_to_ptr.vmem [resolvable:$true] %s50_s18 }
   0xd   :  { %56 = dma.hbm_to_vmem [thread:$0]  %s49_s16, 2048, %s51_s18, [#allocation6], %s1386_s9, %s1386_s9, %s1387_s10  }
   0xe   :  { %s63_s22 = sshll.u32 %s1392_s21, 4  ;;  %s64_s22 = int_to_ptr.vmem [resolvable:$true] %s63_s22 }
   0xf   :  { %69 = dma.hbm_to_vmem [thread:$0]  %s62_s20, 512, %s64_s22, [#allocation9], %s1386_s9, %s1386_s9, %s1387_s10  }
  0x10   :  { %1375 = dma.done.wait [#allocation3], 256  }
  0x11   :  { %1376 = vsyncadd [#allocation3], 4294967040 }
  0x12   :  { %1377 = dma.done.wait [#allocation6], 2560  }
  0x13   :  { %1378 = vsyncadd [#allocation6], 4294964736 }
  0x14   :  { %1379 = dma.done.wait [#allocation9], 512  }
  0x15   :  { %1380 = vsyncadd [#allocation9], 4294966784  ;;  %v1448_v0 = vld [vmem:[#allocation7 + $0x78] sm:$0xff]  ;;  %v1450_v1 = vld [vmem:[#allocation7 + $0x68] sm:$0xff]  ;;  %vm100_vm0 = vcmask 130048   ;;  %vm171_vm1 = vcmask 523264  }
  0x16   :  { %203 = vmatpush.msra.mxu3 %v1448_v0  ;;  %v1453_v2 = vld [vmem:[#allocation7 + $0x58] sm:$0xff]  ;;  %v93_v4 = vld [vmem:[#allocation5 + $0x8] sm:$0xff]  ;;  %v90_v6 = vld [vmem:[#allocation2] sm:$0xff]  ;;  %s1071_s28 = sshll.u32 %s1721_s7, 4  ;;  %s1395_s29 = smov [#allocation10]   ;;  %s1072_s28 = int_to_ptr.hbm [resolvable:$true] %s1071_s28 }
  0x17   :  { %v95_v3 = vld [vmem:[#allocation5 + $0x18] sm:$0xff]  ;;  %v1456_v5 = vld [vmem:[#allocation7 + $0x48] sm:$0xff]  ;;  %v1458_v7 = vld [vmem:[#allocation7 + $0x70] sm:$0xff]  ;;  %s1058_s30 = sshll.u32 %s1395_s29, 4  ;;  %s1060_s7 = sshll.u32 %s1720_s6, 4  ;;  %s1059_s30 = int_to_ptr.vmem [resolvable:$true] %s1058_s30  ;;  %s1061_s7 = int_to_ptr.hbm [resolvable:$true] %s1060_s7 }
  0x18   :  { %204 = vmatpush.msra.mxu3 %v1450_v1  ;;  %144 = vmatpush.msra.mxu1 %v95_v3  ;;  %v1462_v8 = vld [vmem:[#allocation7 + $0x60] sm:$0xff]  ;;  %v1464_v9 = vld [vmem:[#allocation7 + $0x38] sm:$0xff]  ;;  %v94_v10 = vld [vmem:[#allocation5 + $0x10] sm:$0xff] }
  0x19   :  { %183 = vmatpush.msra.mxu2 %v1458_v7  ;;  %v1468_v11 = vld [vmem:[#allocation7 + $0x50] sm:$0xff]  ;;  %v92_v12 = vld [vmem:[#allocation5] sm:$0xff]  ;;  %v1470_v13 = vld [vmem:[#allocation7 + $0x28] sm:$0xff]  ;;  %121 = vmatpush.msra.mxu0 %v94_v10 }
  0x1a   :  { %205 = vmatpush.msra.mxu3 %v1453_v2  ;;  %145 = vmatpush.msra.mxu1 %v93_v4  ;;  %v1474_v14 = vld [vmem:[#allocation7 + $0x40] sm:$0xff]  ;;  %v1477_v15 = vld [vmem:[#allocation7 + $0x18] sm:$0xff]  ;;  %v1481_v16 = vld [vmem:[#allocation7 + $0x30] sm:$0xff] }
  0x1b   :  { %1090 = vmatmul.msk.f32.vlgmr.msra.gmra.mxu1 %vm100_vm0, %v90_v6  ;;  %184 = vmatpush.msra.mxu2 %v1462_v8  ;;  %v1484_v17 = vld [vmem:[#allocation7 + $0x8] sm:$0xff]  ;;  %v169_v18 = vld [vmem:[%s1718_s4] sm:$0x3]  ;;  %v1492_v19 = vld [vmem:[#allocation7 + $0x20] sm:$0xff]  ;;  %s1393_s4 = smov 64  }
  0x1c   :  { %206 = vmatpush.msra.mxu3 %v1456_v5  ;;  %308 = vmatpush.msrb.mxu1 %v1448_v0  ;;  %v1498_v20 = vld [vmem:[#allocation7 + $0x10] sm:$0xff]  ;;  %v1503_v21 = vld [vmem:[#allocation7] sm:$0xff]  ;;  %v97_v22 = vld [vmem:[#allocation8 + $0x8] sm:$0xff] }
  0x1d   :  { %185 = vmatpush.msra.mxu2 %v1468_v11  ;;  %122 = vmatpush.msra.mxu0 %v92_v12  ;;  %v170_v28 = vld [vmem:[%s1719_s5] sm:$0x3]  ;;  %v96_v29 = vld [vmem:[#allocation8] sm:$0xff]  ;;  %v91_v49 = vld [vmem:[#allocation2 + $0x8] sm:$0xff]  ;;  %s1394_s5 = smov [#allocation11]  }
  0x1e   :  { %207 = vmatpush.msra.mxu3 %v1464_v9  ;;  %1088 = vmatmul.msk.f32.vlgmr.msra.gmra.mxu0 %vm100_vm0, %v90_v6  ;;  %s1069_s25 = sshll.u32 %s1394_s5, 4  ;;  %s1070_s25 = int_to_ptr.vmem [resolvable:$true] %s1069_s25 }
  0x1f   :  { %186 = vmatpush.msra.mxu2 %v1474_v14  ;;  %288 = vmatpush.msrb.mxu0 %v1458_v7 }
  0x20   :  { %208 = vmatpush.msra.mxu3 %v1470_v13  ;;  %309 = vmatpush.msrb.mxu1 %v1450_v1 }
  0x21   :  { %187 = vmatpush.msra.mxu2 %v1481_v16  ;;  %289 = vmatpush.msrb.mxu0 %v1462_v8 }
  0x22   :  { %209 = vmatpush.msra.mxu3 %v1477_v15  ;;  %310 = vmatpush.msrb.mxu1 %v1453_v2 }
  0x23   :  { %188 = vmatpush.msra.mxu2 %v1492_v19  ;;  %290 = vmatpush.msrb.mxu0 %v1468_v11 }
  0x24   :  { %210 = vmatpush.msra.mxu3 %v1484_v17  ;;  %311 = vmatpush.msrb.mxu1 %v1456_v5 }
  0x25   :  { %1093 = vmatmul.msk.f32.vlgmr.msra.gmra.mxu3 %vm171_vm1, %v169_v18  ;;  %189 = vmatpush.msra.mxu2 %v1498_v20 }
  0x26   :  { %419 = vmatpush.msrb.mxu3 %v1448_v0  ;;  %291 = vmatpush.msrb.mxu0 %v1474_v14 }
  0x27   :  { %312 = vmatpush.msrb.mxu1 %v1464_v9  ;;  %190 = vmatpush.msra.mxu2 %v1503_v21 }
  0x28   :  { %420 = vmatpush.msrb.mxu3 %v1450_v1  ;;  %1092 = vmatmul.msk.f32.vlgmr.msra.gmra.mxu2 %vm171_vm1, %v169_v18 }
  0x29   :  { %292 = vmatpush.msrb.mxu0 %v1481_v16  ;;  %313 = vmatpush.msrb.mxu1 %v1470_v13 }
  0x2a   :  { %399 = vmatpush.msrb.mxu2 %v1458_v7  ;;  %421 = vmatpush.msrb.mxu3 %v1453_v2 }
  0x2b   :  { %293 = vmatpush.msrb.mxu0 %v1492_v19  ;;  %314 = vmatpush.msrb.mxu1 %v1477_v15 }
  0x2c   :  { %400 = vmatpush.msrb.mxu2 %v1462_v8  ;;  %422 = vmatpush.msrb.mxu3 %v1456_v5 }
  0x2d   :  { %294 = vmatpush.msrb.mxu0 %v1498_v20  ;;  %315 = vmatpush.msrb.mxu1 %v1484_v17 }
  0x2e   :  { %401 = vmatpush.msrb.mxu2 %v1468_v11  ;;  %423 = vmatpush.msrb.mxu3 %v1464_v9 }
  0x2f   :  { %295 = vmatpush.msrb.mxu0 %v1503_v21  ;;  %530 = vmatpush.msra.mxu1 %v1448_v0 }
  0x30   :  { %402 = vmatpush.msrb.mxu2 %v1474_v14  ;;  %424 = vmatpush.msrb.mxu3 %v1470_v13 }
  0x31   :  { %510 = vmatpush.msra.mxu0 %v1458_v7  ;;  %531 = vmatpush.msra.mxu1 %v1450_v1 }
  0x32   :  { %403 = vmatpush.msrb.mxu2 %v1481_v16  ;;  %425 = vmatpush.msrb.mxu3 %v1477_v15 }
  0x33   :  { %511 = vmatpush.msra.mxu0 %v1462_v8  ;;  %532 = vmatpush.msra.mxu1 %v1453_v2 }
  0x34   :  { %404 = vmatpush.msrb.mxu2 %v1492_v19  ;;  %426 = vmatpush.msrb.mxu3 %v1484_v17 }
  0x35   :  { %512 = vmatpush.msra.mxu0 %v1468_v11  ;;  %533 = vmatpush.msra.mxu1 %v1456_v5 }
  0x36   :  { %405 = vmatpush.msrb.mxu2 %v1498_v20  ;;  %641 = vmatpush.msra.mxu3 %v1448_v0 }
  0x37   :  { %513 = vmatpush.msra.mxu0 %v1474_v14  ;;  %534 = vmatpush.msra.mxu1 %v1464_v9 }
  0x38   :  { %406 = vmatpush.msrb.mxu2 %v1503_v21  ;;  %642 = vmatpush.msra.mxu3 %v1450_v1 }
  0x39   :  { %514 = vmatpush.msra.mxu0 %v1481_v16  ;;  %535 = vmatpush.msra.mxu1 %v1470_v13 }
  0x3a   :  { %621 = vmatpush.msra.mxu2 %v1458_v7  ;;  %643 = vmatpush.msra.mxu3 %v1453_v2 }
  0x3b   :  { %515 = vmatpush.msra.mxu0 %v1492_v19  ;;  %536 = vmatpush.msra.mxu1 %v1477_v15 }
  0x3c   :  { %622 = vmatpush.msra.mxu2 %v1462_v8  ;;  %644 = vmatpush.msra.mxu3 %v1456_v5 }
  0x3d   :  { %516 = vmatpush.msra.mxu0 %v1498_v20  ;;  %537 = vmatpush.msra.mxu1 %v1484_v17 }
  0x3e   :  { %623 = vmatpush.msra.mxu2 %v1468_v11  ;;  %645 = vmatpush.msra.mxu3 %v1464_v9 }
  0x3f   :  { %517 = vmatpush.msra.mxu0 %v1503_v21  ;;  %1091 = vmatmul.msk.f32.gmra.mxu1 %vm100_vm0, %v91_v49 }
  0x40   :  { %624 = vmatpush.msra.mxu2 %v1474_v14  ;;  %646 = vmatpush.msra.mxu3 %v1470_v13 }
  0x41   :  { %1089 = vmatmul.msk.f32.gmra.mxu0 %vm100_vm0, %v91_v49 }
  0x42   :  { %625 = vmatpush.msra.mxu2 %v1481_v16  ;;  %647 = vmatpush.msra.mxu3 %v1477_v15 }
  0x44   :  { %626 = vmatpush.msra.mxu2 %v1492_v19  ;;  %648 = vmatpush.msra.mxu3 %v1484_v17 }
  0x46   :  { %627 = vmatpush.msra.mxu2 %v1498_v20 }
  0x48   :  { %628 = vmatpush.msra.mxu2 %v1503_v21 }
  0x98   :  { %v147_v23 = vpop.f32.mrf.mxu1 }
  0x99   :  { %v1567_v24 = vadd.f32 %v147_v23, %v97_v22 }
  0x9b   :  { %v124_v30 = vpop.f32.mrf.mxu0 }
  0x9c   :  { %v1575_v31 = vadd.f32 %v124_v30, %v96_v29 }
  0xa8   :  { %v212_v25 = vpop.f32.mrf.mxu3 }
  0xa9   :  { %v216_v26 = vadd.f32 %v212_v25, %v1567_v24 }
  0xab   :  { %1135 = vtanh.f32 %v216_v26  ;;  %v192_v32 = vpop.f32.mrf.mxu2  ;;  %v1095_v55 = vmul.f32 -1.442695, %v216_v26 }
  0xac   :  { %v215_v33 = vadd.f32 %v192_v32, %v1575_v31 }
  0xae   :  { %v1094_v34 = vmul.f32 -1.442695, %v215_v33 }
  0xb0   :  { %1137 = vpow2.f32 %v1094_v34 }
  0xb1   :  { %v1136_v27 = vpop.eup %1135 }
  0xb2   :  { %262 = vrot.lane.b32.xlu0 %v1136_v27, %s1393_s4 }
  0xb6   :  { %v1138_v35 = vpop.eup %1137 }
  0xb7   :  { %v223_v36 = vadd.f32 1.0, %v1138_v35 }
  0xb9   :  { %1139 = vrcp.f32 %v223_v36  ;;  %vm230_vm2 = vweird.f32 %v223_v36  ;;  %v236_v41 = vand.u32 2147483648, %v223_v36  ;;  %v234_v43 = vand.u32 2147483647, %v223_v36 }
  0xba   :  { %257 = vrot.lane.b32.xlu0 %v170_v28, %s1393_s4 }
  0xbb   :  { %v237_v44 = vor.u32 1.1754944e-38, %v236_v41  ;;  %vm235_vm5 = vcmp.eq.f32.partialorder %v234_v43, 8.507059e+37 }
  0xbc   :  { %v1603_v22 = vpop.f32.mrf.mxu1 }
  0xbe   :  { %v1607_v28 = vpop.f32.mrf.mxu0 }
  0xbf   :  { %v1140_v37 = vpop.eup %1139 }
  0xc0   :  { %v226_v38 = vmul.f32 %v1140_v37, %v223_v36  ;;  %vm231_vm3 = vweird.f32 %v1140_v37 }
  0xc1   :  { %vm232_vm4 = vmor %vm230_vm2, %vm231_vm3 }
  0xc2   :  { %v227_v39 = vsub.f32 1.0, %v226_v38 }
  0xc4   :  { %v228_v40 = vmul.f32 %v1140_v37, %v227_v39 }
  0xc6   :  { %v229_v42 = vadd.f32 %v1140_v37, %v228_v40 }
  0xc8   :  { %v233_v45 = vsel %vm232_vm4, %v1140_v37, %v229_v42 }
  0xc9   :  { %v238_v47 = vsel %vm235_vm5, %v237_v44, %v233_v45 }
 0x124   :  { %v263_v46 = vpop.permute.xlu0 %262 }
 0x125   :  { %v265_v48 = vmul.f32 %v263_v46, %v238_v47 }
 0x127   :  { %267 = vrot.lane.b32.xlu1 %v265_v48, %s1393_s4 }
 0x12c   :  { %v258_v50 = vpop.permute.xlu0 %257 }
 0x12d   :  { %v260_v51 = vmul.f32 %v258_v50, %v238_v47 }
 0x199   :  { %v268_v52 = vpop.permute.xlu1 %267 }
 0x19a   :  { %v1581_v53 = vadd.f32 %v268_v52, %v260_v51 }
 0x19c   :  { %1141 = vtanh.f32 %v1581_v53  ;;  %v368_v48 = vrot.slane %v1581_v53, 6 }
 0x19d   :  { %1143 = vpow2.f32 %v1095_v55 }
 0x1a2   :  { %v1142_v54 = vpop.eup %1141 }
 0x1a3   :  { %273 = vrot.lane.b32.xlu1 %v1142_v54, %s1393_s4  ;;  %v1144_v56 = vpop.eup %1143 }
 0x1a4   :  { %v224_v57 = vadd.f32 1.0, %v1144_v56 }
 0x1a6   :  { %1145 = vrcp.f32 %v224_v57  ;;  %v251_v63 = vand.u32 2147483648, %v224_v57  ;;  %vm245_vm7 = vweird.f32 %v224_v57  ;;  %v249_v3 = vand.u32 2147483647, %v224_v57 }
 0x1a8   :  { %v252_v6 = vor.u32 1.1754944e-38, %v251_v63  ;;  %vm250_vm9 = vcmp.eq.f32.partialorder %v249_v3, 8.507059e+37 }
 0x1ac   :  { %v1146_v58 = vpop.eup %1145 }
 0x1ad   :  { %v241_v59 = vmul.f32 %v1146_v58, %v224_v57  ;;  %vm246_vm6 = vweird.f32 %v1146_v58 }
 0x1ae   :  { %vm247_vm8 = vmor %vm245_vm7, %vm246_vm6 }
 0x1af   :  { %v242_v60 = vsub.f32 1.0, %v241_v59 }
 0x1b1   :  { %v243_v61 = vmul.f32 %v1146_v58, %v242_v60 }
 0x1b3   :  { %v244_v62 = vadd.f32 %v1146_v58, %v243_v61 }
 0x1b5   :  { %v248_v4 = vsel %vm247_vm8, %v1146_v58, %v244_v62 }
 0x1b6   :  { %v253_v10 = vsel %vm250_vm9, %v252_v6, %v248_v4 }
 0x215   :  { %v274_v12 = vpop.permute.xlu1 %273 }
 0x216   :  { %v276_v18 = vmul.f32 %v274_v12, %v253_v10 }
 0x218   :  { %1096 = vmatmul.msk.f32.vlgmr.msrb.gmra.mxu0 %vm171_vm1, %v276_v18  ;;  %1097 = vmatmul.msk.f32.vlgmr.msrb.gmra.mxu1 %vm171_vm1, %v276_v18 }
 0x219   :  { %725 = vmatpush.msrb.mxu0 %v1458_v7  ;;  %745 = vmatpush.msrb.mxu1 %v1448_v0 }
 0x21b   :  { %726 = vmatpush.msrb.mxu0 %v1462_v8  ;;  %746 = vmatpush.msrb.mxu1 %v1450_v1 }
 0x21d   :  { %727 = vmatpush.msrb.mxu0 %v1468_v11  ;;  %747 = vmatpush.msrb.mxu1 %v1453_v2 }
 0x21f   :  { %728 = vmatpush.msrb.mxu0 %v1474_v14  ;;  %748 = vmatpush.msrb.mxu1 %v1456_v5 }
 0x221   :  { %729 = vmatpush.msrb.mxu0 %v1481_v16  ;;  %749 = vmatpush.msrb.mxu1 %v1464_v9 }
 0x223   :  { %730 = vmatpush.msrb.mxu0 %v1492_v19  ;;  %750 = vmatpush.msrb.mxu1 %v1470_v13 }
 0x225   :  { %731 = vmatpush.msrb.mxu0 %v1498_v20  ;;  %751 = vmatpush.msrb.mxu1 %v1477_v15 }
 0x227   :  { %732 = vmatpush.msrb.mxu0 %v1503_v21  ;;  %752 = vmatpush.msrb.mxu1 %v1484_v17 }
 0x295   :  { %v317_v23 = vpop.f32.mrf.mxu1  ;;  %v297_v29 = vpop.f32.mrf.mxu0 }
 0x296   :  { %v323_v25 = vrot.slane %v317_v23, 6  ;;  %v322_v30 = vrot.slane %v297_v29, 6 }
 0x298   :  { %v327_v26 = vadd.f32 %v323_v25, %v1567_v24  ;;  %v326_v32 = vadd.f32 %v322_v30, %v1575_v31 }
 0x29a   :  { %1147 = vtanh.f32 %v327_v26  ;;  %v1098_v33 = vmul.f32 -1.442695, %v326_v32  ;;  %v1099_v54 = vmul.f32 -1.442695, %v327_v26 }
 0x29c   :  { %1149 = vpow2.f32 %v1098_v33 }
 0x2a0   :  { %v1148_v27 = vpop.eup %1147 }
 0x2a1   :  { %372 = vrot.lane.b32.xlu2 %v1148_v27, %s1393_s4 }
 0x2a2   :  { %v1150_v34 = vpop.eup %1149 }
 0x2a3   :  { %v334_v35 = vadd.f32 1.0, %v1150_v34 }
 0x2a5   :  { %1151 = vrcp.f32 %v334_v35  ;;  %v347_v41 = vand.u32 2147483648, %v334_v35  ;;  %vm341_vm11 = vweird.f32 %v334_v35  ;;  %v345_v42 = vand.u32 2147483647, %v334_v35 }
 0x2a7   :  { %v348_v44 = vor.u32 1.1754944e-38, %v347_v41  ;;  %vm346_vm13 = vcmp.eq.f32.partialorder %v345_v42, 8.507059e+37 }
 0x2ab   :  { %v1152_v36 = vpop.eup %1151 }
 0x2ac   :  { %v337_v37 = vmul.f32 %v1152_v36, %v334_v35  ;;  %vm342_vm10 = vweird.f32 %v1152_v36 }
 0x2ad   :  { %vm343_vm12 = vmor %vm341_vm11, %vm342_vm10 }
 0x2ae   :  { %v338_v38 = vsub.f32 1.0, %v337_v37 }
 0x2b0   :  { %v339_v39 = vmul.f32 %v1152_v36, %v338_v38 }
 0x2b2   :  { %v340_v40 = vadd.f32 %v1152_v36, %v339_v39 }
 0x2b4   :  { %v344_v43 = vsel %vm343_vm12, %v1152_v36, %v340_v40 }
 0x2b5   :  { %v349_v46 = vsel %vm346_vm13, %v348_v44, %v344_v43 }
 0x2b6   :  { %v370_v49 = vmul.f32 %v368_v48, %v349_v46 }
 0x2fb   :  { %v373_v45 = vpop.permute.xlu2 %372 }
 0x2fc   :  { %v375_v47 = vmul.f32 %v373_v45, %v349_v46 }
 0x2fe   :  { %377 = vrot.lane.b32.xlu2 %v375_v47, %s1393_s4 }
 0x358   :  { %v378_v50 = vpop.permute.xlu2 %377 }
 0x359   :  { %v1612_v51 = vadd.f32 %v378_v50, %v370_v49 }
 0x35b   :  { %1153 = vtanh.f32 %v1612_v51  ;;  %v479_v47 = vrot.slane %v1612_v51, 6 }
 0x35c   :  { %1155 = vpow2.f32 %v1099_v54 }
 0x361   :  { %v1154_v52 = vpop.eup %1153 }
 0x362   :  { %383 = vrot.lane.b32.xlu0 %v1154_v52, %s1393_s4  ;;  %v1156_v55 = vpop.eup %1155 }
 0x363   :  { %v335_v56 = vadd.f32 1.0, %v1156_v55 }
 0x365   :  { %1157 = vrcp.f32 %v335_v56  ;;  %v362_v53 = vand.u32 2147483648, %v335_v56  ;;  %vm356_vm15 = vweird.f32 %v335_v56  ;;  %v360_v62 = vand.u32 2147483647, %v335_v56 }
 0x367   :  { %v363_v3 = vor.u32 1.1754944e-38, %v362_v53  ;;  %vm361_vm2 = vcmp.eq.f32.partialorder %v360_v62, 8.507059e+37 }
 0x36b   :  { %v1158_v57 = vpop.eup %1157 }
 0x36c   :  { %v352_v58 = vmul.f32 %v1158_v57, %v335_v56  ;;  %vm357_vm14 = vweird.f32 %v1158_v57 }
 0x36d   :  { %vm358_vm0 = vmor %vm356_vm15, %vm357_vm14 }
 0x36e   :  { %v353_v59 = vsub.f32 1.0, %v352_v58 }
 0x370   :  { %v354_v60 = vmul.f32 %v1158_v57, %v353_v59 }
 0x372   :  { %v355_v61 = vadd.f32 %v1158_v57, %v354_v60 }
 0x374   :  { %v359_v63 = vsel %vm358_vm0, %v1158_v57, %v355_v61 }
 0x375   :  { %v364_v4 = vsel %vm361_vm2, %v363_v3, %v359_v63 }
 0x3d4   :  { %v384_v6 = vpop.permute.xlu0 %383 }
 0x3d5   :  { %v386_v10 = vmul.f32 %v384_v6, %v364_v4 }
 0x3d7   :  { %v388_v12 = vrot.slane %v386_v10, 2 }
 0x3d9   :  { %1100 = vmatmul.msk.f32.vlgmr.msrb.gmra.mxu2 %vm171_vm1, %v388_v12  ;;  %1101 = vmatmul.msk.f32.vlgmr.msrb.gmra.mxu3 %vm171_vm1, %v388_v12 }
 0x3da   :  { %836 = vmatpush.msrb.mxu2 %v1458_v7  ;;  %856 = vmatpush.msrb.mxu3 %v1448_v0 }
 0x3dc   :  { %837 = vmatpush.msrb.mxu2 %v1462_v8  ;;  %857 = vmatpush.msrb.mxu3 %v1450_v1 }
 0x3de   :  { %838 = vmatpush.msrb.mxu2 %v1468_v11  ;;  %858 = vmatpush.msrb.mxu3 %v1453_v2 }
 0x3e0   :  { %839 = vmatpush.msrb.mxu2 %v1474_v14  ;;  %859 = vmatpush.msrb.mxu3 %v1456_v5 }
 0x3e2   :  { %840 = vmatpush.msrb.mxu2 %v1481_v16  ;;  %860 = vmatpush.msrb.mxu3 %v1464_v9 }
 0x3e4   :  { %841 = vmatpush.msrb.mxu2 %v1492_v19  ;;  %861 = vmatpush.msrb.mxu3 %v1470_v13 }
 0x3e6   :  { %842 = vmatpush.msrb.mxu2 %v1498_v20  ;;  %862 = vmatpush.msrb.mxu3 %v1477_v15 }
 0x3e8   :  { %843 = vmatpush.msrb.mxu2 %v1503_v21  ;;  %863 = vmatpush.msrb.mxu3 %v1484_v17 }
 0x45c   :  { %v428_v18 = vpop.f32.mrf.mxu3  ;;  %v408_v27 = vpop.f32.mrf.mxu2 }
 0x45d   :  { %v434_v23 = vrot.slane %v428_v18, 4  ;;  %v433_v29 = vrot.slane %v408_v27, 4 }
 0x45f   :  { %v438_v25 = vadd.f32 %v434_v23, %v1567_v24  ;;  %v437_v30 = vadd.f32 %v433_v29, %v1575_v31 }
 0x461   :  { %1159 = vtanh.f32 %v438_v25  ;;  %v1102_v32 = vmul.f32 -1.442695, %v437_v30  ;;  %v1103_v54 = vmul.f32 -1.442695, %v438_v25 }
 0x463   :  { %1161 = vpow2.f32 %v1102_v32 }
 0x467   :  { %v1160_v26 = vpop.eup %1159 }
 0x468   :  { %483 = vrot.lane.b32.xlu1 %v1160_v26, %s1393_s4 }
 0x469   :  { %v1162_v33 = vpop.eup %1161 }
 0x46a   :  { %v445_v34 = vadd.f32 1.0, %v1162_v33 }
 0x46c   :  { %1163 = vrcp.f32 %v445_v34  ;;  %v458_v40 = vand.u32 2147483648, %v445_v34  ;;  %vm452_vm4 = vweird.f32 %v445_v34  ;;  %v456_v41 = vand.u32 2147483647, %v445_v34 }
 0x46e   :  { %v459_v43 = vor.u32 1.1754944e-38, %v458_v40  ;;  %vm457_vm6 = vcmp.eq.f32.partialorder %v456_v41, 8.507059e+37 }
 0x472   :  { %v1164_v35 = vpop.eup %1163 }
 0x473   :  { %v448_v36 = vmul.f32 %v1164_v35, %v445_v34  ;;  %vm453_vm3 = vweird.f32 %v1164_v35 }
 0x474   :  { %vm454_vm5 = vmor %vm452_vm4, %vm453_vm3 }
 0x475   :  { %v449_v37 = vsub.f32 1.0, %v448_v36 }
 0x477   :  { %v450_v38 = vmul.f32 %v1164_v35, %v449_v37 }
 0x479   :  { %v451_v39 = vadd.f32 %v1164_v35, %v450_v38 }
 0x47b   :  { %v455_v42 = vsel %vm454_vm5, %v1164_v35, %v451_v39 }
 0x47c   :  { %v460_v45 = vsel %vm457_vm6, %v459_v43, %v455_v42 }
 0x47d   :  { %v481_v48 = vmul.f32 %v479_v47, %v460_v45 }
 0x4da   :  { %v484_v44 = vpop.permute.xlu1 %483 }
 0x4db   :  { %v486_v46 = vmul.f32 %v484_v44, %v460_v45 }
 0x4dd   :  { %488 = vrot.lane.b32.xlu2 %v486_v46, %s1393_s4 }
 0x537   :  { %v489_v49 = vpop.permute.xlu2 %488 }
 0x538   :  { %v1639_v50 = vadd.f32 %v489_v49, %v481_v48  ;;  %v99_v49 = vld [vmem:[#allocation8 + $0x18] sm:$0xff] }
 0x53a   :  { %1165 = vtanh.f32 %v1639_v50  ;;  %v590_v26 = vrot.slane %v1639_v50, 6  ;;  %v1673_v50 = vadd.f32 %v1603_v22, %v99_v49 }
 0x53b   :  { %1167 = vpow2.f32 %v1103_v54 }
 0x540   :  { %v1166_v52 = vpop.eup %1165 }
 0x541   :  { %494 = vrot.lane.b32.xlu0 %v1166_v52, %s1393_s4  ;;  %v1168_v55 = vpop.eup %1167 }
 0x542   :  { %v446_v56 = vadd.f32 1.0, %v1168_v55 }
 0x544   :  { %1169 = vrcp.f32 %v446_v56  ;;  %v473_v51 = vand.u32 2147483648, %v446_v56  ;;  %vm467_vm8 = vweird.f32 %v446_v56  ;;  %v471_v53 = vand.u32 2147483647, %v446_v56 }
 0x546   :  { %v474_v63 = vor.u32 1.1754944e-38, %v473_v51  ;;  %vm472_vm10 = vcmp.eq.f32.partialorder %v471_v53, 8.507059e+37 }
 0x54a   :  { %v1170_v57 = vpop.eup %1169 }
 0x54b   :  { %v463_v58 = vmul.f32 %v1170_v57, %v446_v56  ;;  %vm468_vm7 = vweird.f32 %v1170_v57  ;;  %v98_v56 = vld [vmem:[#allocation8 + $0x10] sm:$0xff] }
 0x54c   :  { %vm469_vm9 = vmor %vm467_vm8, %vm468_vm7 }
 0x54d   :  { %v464_v59 = vsub.f32 1.0, %v463_v58  ;;  %v1678_v58 = vadd.f32 %v1607_v28, %v98_v56 }
 0x54f   :  { %v465_v60 = vmul.f32 %v1170_v57, %v464_v59 }
 0x551   :  { %v466_v61 = vadd.f32 %v1170_v57, %v465_v60 }
 0x553   :  { %v470_v62 = vsel %vm469_vm9, %v1170_v57, %v466_v61 }
 0x554   :  { %v475_v3 = vsel %vm472_vm10, %v474_v63, %v470_v62 }
 0x5b3   :  { %v495_v4 = vpop.permute.xlu0 %494 }
 0x5b4   :  { %v497_v6 = vmul.f32 %v495_v4, %v475_v3 }
 0x5b6   :  { %v499_v10 = vrot.slane %v497_v6, 4 }
 0x5b8   :  { %1104 = vmatmul.msk.f32.vlgmr.msra.gmra.mxu0 %vm171_vm1, %v499_v10  ;;  %1105 = vmatmul.msk.f32.vlgmr.msra.gmra.mxu1 %vm171_vm1, %v499_v10 }
 0x5b9   :  { %947 = vmatpush.msra.mxu0 %v1458_v7  ;;  %967 = vmatpush.msra.mxu1 %v1448_v0 }
 0x5bb   :  { %948 = vmatpush.msra.mxu0 %v1462_v8  ;;  %968 = vmatpush.msra.mxu1 %v1450_v1 }
 0x5bd   :  { %949 = vmatpush.msra.mxu0 %v1468_v11  ;;  %969 = vmatpush.msra.mxu1 %v1453_v2 }
 0x5bf   :  { %950 = vmatpush.msra.mxu0 %v1474_v14  ;;  %970 = vmatpush.msra.mxu1 %v1456_v5 }
 0x5c1   :  { %951 = vmatpush.msra.mxu0 %v1481_v16  ;;  %971 = vmatpush.msra.mxu1 %v1464_v9 }
 0x5c3   :  { %952 = vmatpush.msra.mxu0 %v1492_v19  ;;  %972 = vmatpush.msra.mxu1 %v1470_v13 }
 0x5c5   :  { %953 = vmatpush.msra.mxu0 %v1498_v20  ;;  %973 = vmatpush.msra.mxu1 %v1477_v15 }
 0x5c7   :  { %954 = vmatpush.msra.mxu0 %v1503_v21  ;;  %974 = vmatpush.msra.mxu1 %v1484_v17 }
 0x635   :  { %v539_v0 = vpop.f32.mrf.mxu1  ;;  %v519_v7 = vpop.f32.mrf.mxu0 }
 0x636   :  { %v545_v1 = vrot.slane %v539_v0, 2  ;;  %v544_v8 = vrot.slane %v519_v7, 2 }
 0x638   :  { %v549_v2 = vadd.f32 %v545_v1, %v1567_v24  ;;  %v548_v9 = vadd.f32 %v544_v8, %v1575_v31 }
 0x63a   :  { %1171 = vtanh.f32 %v549_v2  ;;  %v1106_v11 = vmul.f32 -1.442695, %v548_v9  ;;  %v1107_v33 = vmul.f32 -1.442695, %v549_v2 }
 0x63c   :  { %1173 = vpow2.f32 %v1106_v11 }
 0x640   :  { %v1172_v5 = vpop.eup %1171 }
 0x641   :  { %594 = vrot.lane.b32.xlu1 %v1172_v5, %s1393_s4 }
 0x642   :  { %v1174_v13 = vpop.eup %1173 }
 0x643   :  { %v556_v14 = vadd.f32 1.0, %v1174_v13 }
 0x645   :  { %1175 = vrcp.f32 %v556_v14  ;;  %v569_v21 = vand.u32 2147483648, %v556_v14  ;;  %vm563_vm12 = vweird.f32 %v556_v14  ;;  %v567_v24 = vand.u32 2147483647, %v556_v14 }
 0x647   :  { %v570_v18 = vor.u32 1.1754944e-38, %v569_v21  ;;  %vm568_vm14 = vcmp.eq.f32.partialorder %v567_v24, 8.507059e+37 }
 0x64b   :  { %v1176_v15 = vpop.eup %1175 }
 0x64c   :  { %v559_v16 = vmul.f32 %v1176_v15, %v556_v14  ;;  %vm564_vm11 = vweird.f32 %v1176_v15 }
 0x64d   :  { %vm565_vm13 = vmor %vm563_vm12, %vm564_vm11 }
 0x64e   :  { %v560_v17 = vsub.f32 1.0, %v559_v16 }
 0x650   :  { %v561_v19 = vmul.f32 %v1176_v15, %v560_v17 }
 0x652   :  { %v562_v20 = vadd.f32 %v1176_v15, %v561_v19 }
 0x654   :  { %v566_v12 = vsel %vm565_vm13, %v1176_v15, %v562_v20 }
 0x655   :  { %v571_v31 = vsel %vm568_vm14, %v570_v18, %v566_v12 }
 0x656   :  { %v592_v27 = vmul.f32 %v590_v26, %v571_v31 }
 0x6b3   :  { %v595_v23 = vpop.permute.xlu1 %594 }
 0x6b4   :  { %v597_v25 = vmul.f32 %v595_v23, %v571_v31 }
 0x6b6   :  { %599 = vrot.lane.b32.xlu2 %v597_v25, %s1393_s4 }
 0x710   :  { %v600_v29 = vpop.permute.xlu2 %599 }
 0x711   :  { %v1666_v30 = vadd.f32 %v600_v29, %v592_v27 }
 0x713   :  { %1177 = vtanh.f32 %v1666_v30  ;;  %v695_v5 = vrot.slane %v1666_v30, 6 }
 0x714   :  { %1179 = vpow2.f32 %v1107_v33 }
 0x719   :  { %v1178_v32 = vpop.eup %1177 }
 0x71a   :  { %605 = vrot.lane.b32.xlu0 %v1178_v32, %s1393_s4  ;;  %v1180_v34 = vpop.eup %1179 }
 0x71b   :  { %v557_v35 = vadd.f32 1.0, %v1180_v34 }
 0x71d   :  { %1181 = vrcp.f32 %v557_v35  ;;  %v584_v41 = vand.u32 2147483648, %v557_v35  ;;  %vm578_vm0 = vweird.f32 %v557_v35  ;;  %v582_v42 = vand.u32 2147483647, %v557_v35 }
 0x71f   :  { %v585_v44 = vor.u32 1.1754944e-38, %v584_v41  ;;  %vm583_vm3 = vcmp.eq.f32.partialorder %v582_v42, 8.507059e+37 }
 0x723   :  { %v1182_v36 = vpop.eup %1181 }
 0x724   :  { %v574_v37 = vmul.f32 %v1182_v36, %v557_v35  ;;  %vm579_vm15 = vweird.f32 %v1182_v36 }
 0x725   :  { %vm580_vm2 = vmor %vm578_vm0, %vm579_vm15 }
 0x726   :  { %v575_v38 = vsub.f32 1.0, %v574_v37 }
 0x728   :  { %v576_v39 = vmul.f32 %v1182_v36, %v575_v38 }
 0x72a   :  { %v577_v40 = vadd.f32 %v1182_v36, %v576_v39 }
 0x72c   :  { %v581_v43 = vsel %vm580_vm2, %v1182_v36, %v577_v40 }
 0x72d   :  { %v586_v45 = vsel %vm583_vm3, %v585_v44, %v581_v43 }
 0x78c   :  { %v606_v46 = vpop.permute.xlu0 %605 }
 0x78d   :  { %v608_v47 = vmul.f32 %v606_v46, %v586_v45 }
 0x78f   :  { %v610_v48 = vrot.slane %v608_v47, 6 }
 0x791   :  { %1108 = vmatmul.msk.f32.vlgmr.msra.gmra.mxu2 %vm171_vm1, %v610_v48  ;;  %1109 = vmatmul.msk.f32.vlgmr.msra.gmra.mxu3 %vm171_vm1, %v610_v48 }
 0x814   :  { %v650_v52 = vpop.f32.mrf.mxu3  ;;  %v630_v57 = vpop.f32.mrf.mxu2 }
 0x815   :  { %v654_v54 = vadd.f32 %v650_v52, %v1673_v50  ;;  %v653_v59 = vadd.f32 %v630_v57, %v1678_v58 }
 0x817   :  { %1183 = vtanh.f32 %v654_v54  ;;  %v1110_v60 = vmul.f32 -1.442695, %v653_v59  ;;  %v1111_v13 = vmul.f32 -1.442695, %v654_v54 }
 0x819   :  { %1185 = vpow2.f32 %v1110_v60 }
 0x81d   :  { %v1184_v55 = vpop.eup %1183 }
 0x81e   :  { %699 = vrot.lane.b32.xlu1 %v1184_v55, %s1393_s4 }
 0x81f   :  { %v1186_v61 = vpop.eup %1185 }
 0x820   :  { %v661_v51 = vadd.f32 1.0, %v1186_v61 }
 0x822   :  { %1187 = vrcp.f32 %v661_v51  ;;  %v674_v4 = vand.u32 2147483648, %v661_v51  ;;  %vm668_vm5 = vweird.f32 %v661_v51  ;;  %v672_v6 = vand.u32 2147483647, %v661_v51 }
 0x824   :  { %v675_v28 = vor.u32 1.1754944e-38, %v674_v4  ;;  %vm673_vm7 = vcmp.eq.f32.partialorder %v672_v6, 8.507059e+37 }
 0x828   :  { %v1188_v22 = vpop.eup %1187 }
 0x829   :  { %v664_v53 = vmul.f32 %v1188_v22, %v661_v51  ;;  %vm669_vm4 = vweird.f32 %v1188_v22 }
 0x82a   :  { %vm670_vm6 = vmor %vm668_vm5, %vm669_vm4 }
 0x82b   :  { %v665_v62 = vsub.f32 1.0, %v664_v53 }
 0x82d   :  { %v666_v63 = vmul.f32 %v1188_v22, %v665_v62 }
 0x82f   :  { %v667_v3 = vadd.f32 %v1188_v22, %v666_v63 }
 0x831   :  { %v671_v10 = vsel %vm670_vm6, %v1188_v22, %v667_v3 }
 0x832   :  { %v676_v1 = vsel %vm673_vm7, %v675_v28, %v671_v10 }
 0x833   :  { %v697_v7 = vmul.f32 %v695_v5, %v676_v1 }
 0x890   :  { %v700_v0 = vpop.permute.xlu1 %699 }
 0x891   :  { %v702_v2 = vmul.f32 %v700_v0, %v676_v1 }
 0x893   :  { %704 = vrot.lane.b32.xlu2 %v702_v2, %s1393_s4 }
 0x8ed   :  { %v705_v8 = vpop.permute.xlu2 %704 }
 0x8ee   :  { %v707_v9 = vadd.f32 %v705_v8, %v697_v7 }
 0x8f0   :  { %1189 = vtanh.f32 %v707_v9  ;;  %v805_v54 = vrot.slane %v707_v9, 6 }
 0x8f1   :  { %1191 = vpow2.f32 %v1111_v13 }
 0x8f6   :  { %v1190_v11 = vpop.eup %1189 }
 0x8f7   :  { %710 = vrot.lane.b32.xlu0 %v1190_v11, %s1393_s4  ;;  %v1192_v14 = vpop.eup %1191 }
 0x8f8   :  { %v662_v15 = vadd.f32 1.0, %v1192_v14 }
 0x8fa   :  { %1193 = vrcp.f32 %v662_v15  ;;  %v689_v24 = vand.u32 2147483648, %v662_v15  ;;  %vm683_vm9 = vweird.f32 %v662_v15  ;;  %v687_v12 = vand.u32 2147483647, %v662_v15 }
 0x8fc   :  { %v690_v23 = vor.u32 1.1754944e-38, %v689_v24  ;;  %vm688_vm11 = vcmp.eq.f32.partialorder %v687_v12, 8.507059e+37 }
 0x900   :  { %v1194_v16 = vpop.eup %1193 }
 0x901   :  { %v679_v17 = vmul.f32 %v1194_v16, %v662_v15  ;;  %vm684_vm8 = vweird.f32 %v1194_v16 }
 0x902   :  { %vm685_vm10 = vmor %vm683_vm9, %vm684_vm8 }
 0x903   :  { %v680_v19 = vsub.f32 1.0, %v679_v17 }
 0x905   :  { %v681_v20 = vmul.f32 %v1194_v16, %v680_v19 }
 0x907   :  { %v682_v21 = vadd.f32 %v1194_v16, %v681_v20 }
 0x909   :  { %v686_v18 = vsel %vm685_vm10, %v1194_v16, %v682_v21 }
 0x90a   :  { %v691_v31 = vsel %vm688_vm11, %v690_v23, %v686_v18 }
 0x969   :  { %v711_v25 = vpop.permute.xlu0 %710 }
 0x96a   :  { %v713_v26 = vmul.f32 %v711_v25, %v691_v31 }
 0x96c   :  { %1112 = vmatmul.msk.f32.vlgmr.msrb.gmra.mxu0 %vm171_vm1, %v713_v26  ;;  %1113 = vmatmul.msk.f32.vlgmr.msrb.gmra.mxu1 %vm171_vm1, %v713_v26 }
 0x9e9   :  { %v754_v27 = vpop.f32.mrf.mxu1  ;;  %v734_v33 = vpop.f32.mrf.mxu0 }
 0x9ea   :  { %v760_v29 = vrot.slane %v754_v27, 6  ;;  %v759_v34 = vrot.slane %v734_v33, 6 }
 0x9ec   :  { %v764_v30 = vadd.f32 %v760_v29, %v1673_v50  ;;  %v763_v35 = vadd.f32 %v759_v34, %v1678_v58 }
 0x9ee   :  { %1195 = vtanh.f32 %v764_v30  ;;  %v1114_v36 = vmul.f32 -1.442695, %v763_v35  ;;  %v1115_v60 = vmul.f32 -1.442695, %v764_v30 }
 0x9f0   :  { %1197 = vpow2.f32 %v1114_v36 }
 0x9f4   :  { %v1196_v32 = vpop.eup %1195 }
 0x9f5   :  { %809 = vrot.lane.b32.xlu1 %v1196_v32, %s1393_s4 }
 0x9f6   :  { %v1198_v37 = vpop.eup %1197 }
 0x9f7   :  { %v771_v38 = vadd.f32 1.0, %v1198_v37 }
 0x9f9   :  { %1199 = vrcp.f32 %v771_v38  ;;  %v784_v44 = vand.u32 2147483648, %v771_v38  ;;  %vm778_vm13 = vweird.f32 %v771_v38  ;;  %v782_v45 = vand.u32 2147483647, %v771_v38 }
 0x9fb   :  { %v785_v47 = vor.u32 1.1754944e-38, %v784_v44  ;;  %vm783_vm15 = vcmp.eq.f32.partialorder %v782_v45, 8.507059e+37 }
 0x9ff   :  { %v1200_v39 = vpop.eup %1199 }
 0xa00   :  { %v774_v40 = vmul.f32 %v1200_v39, %v771_v38  ;;  %vm779_vm12 = vweird.f32 %v1200_v39 }
 0xa01   :  { %vm780_vm14 = vmor %vm778_vm13, %vm779_vm12 }
 0xa02   :  { %v775_v41 = vsub.f32 1.0, %v774_v40 }
 0xa04   :  { %v776_v42 = vmul.f32 %v1200_v39, %v775_v41 }
 0xa06   :  { %v777_v43 = vadd.f32 %v1200_v39, %v776_v42 }
 0xa08   :  { %v781_v46 = vsel %vm780_vm14, %v1200_v39, %v777_v43 }
 0xa09   :  { %v786_v49 = vsel %vm783_vm15, %v785_v47, %v781_v46 }
 0xa0a   :  { %v807_v55 = vmul.f32 %v805_v54, %v786_v49 }
 0xa67   :  { %v810_v48 = vpop.permute.xlu1 %809 }
 0xa68   :  { %v812_v52 = vmul.f32 %v810_v48, %v786_v49 }
 0xa6a   :  { %814 = vrot.lane.b32.xlu2 %v812_v52, %s1393_s4 }
 0xac4   :  { %v815_v56 = vpop.permute.xlu2 %814 }
 0xac5   :  { %v817_v57 = vadd.f32 %v815_v56, %v807_v55 }
 0xac7   :  { %1201 = vtanh.f32 %v817_v57  ;;  %v916_v32 = vrot.slane %v817_v57, 6 }
 0xac8   :  { %1203 = vpow2.f32 %v1115_v60 }
 0xacd   :  { %v1202_v59 = vpop.eup %1201 }
 0xace   :  { %820 = vrot.lane.b32.xlu0 %v1202_v59, %s1393_s4  ;;  %v1204_v61 = vpop.eup %1203 }
 0xacf   :  { %v772_v51 = vadd.f32 1.0, %v1204_v61 }
 0xad1   :  { %1205 = vrcp.f32 %v772_v51  ;;  %v799_v4 = vand.u32 2147483648, %v772_v51  ;;  %vm793_vm2 = vweird.f32 %v772_v51  ;;  %v797_v6 = vand.u32 2147483647, %v772_v51 }
 0xad3   :  { %v800_v28 = vor.u32 1.1754944e-38, %v799_v4  ;;  %vm798_vm4 = vcmp.eq.f32.partialorder %v797_v6, 8.507059e+37 }
 0xad7   :  { %v1206_v22 = vpop.eup %1205 }
 0xad8   :  { %v789_v53 = vmul.f32 %v1206_v22, %v772_v51  ;;  %vm794_vm0 = vweird.f32 %v1206_v22 }
 0xad9   :  { %vm795_vm3 = vmor %vm793_vm2, %vm794_vm0  ;;  %vm1046_vm0 = vcmask 523270  }
 0xada   :  { %v790_v62 = vsub.f32 1.0, %v789_v53 }
 0xadc   :  { %v791_v63 = vmul.f32 %v1206_v22, %v790_v62 }
 0xade   :  { %v792_v3 = vadd.f32 %v1206_v22, %v791_v63 }
 0xae0   :  { %v796_v10 = vsel %vm795_vm3, %v1206_v22, %v792_v3 }
 0xae1   :  { %v801_v0 = vsel %vm798_vm4, %v800_v28, %v796_v10 }
 0xb40   :  { %v821_v1 = vpop.permute.xlu0 %820 }
 0xb41   :  { %v823_v2 = vmul.f32 %v821_v1, %v801_v0 }
 0xb43   :  { %v825_v5 = vrot.slane %v823_v2, 2 }
 0xb45   :  { %1116 = vmatmul.msk.f32.vlgmr.msrb.gmra.mxu2 %vm171_vm1, %v825_v5  ;;  %1117 = vmatmul.msk.f32.vlgmr.msrb.gmra.mxu3 %vm171_vm1, %v825_v5 }
 0xbc8   :  { %v865_v7 = vpop.f32.mrf.mxu3  ;;  %v845_v13 = vpop.f32.mrf.mxu2 }
 0xbc9   :  { %v871_v8 = vrot.slane %v865_v7, 4  ;;  %v870_v14 = vrot.slane %v845_v13, 4 }
 0xbcb   :  { %v875_v9 = vadd.f32 %v871_v8, %v1673_v50  ;;  %v874_v15 = vadd.f32 %v870_v14, %v1678_v58 }
 0xbcd   :  { %1207 = vtanh.f32 %v875_v9  ;;  %v1118_v16 = vmul.f32 -1.442695, %v874_v15  ;;  %v1119_v37 = vmul.f32 -1.442695, %v875_v9 }
 0xbcf   :  { %1209 = vpow2.f32 %v1118_v16 }
 0xbd3   :  { %v1208_v11 = vpop.eup %1207 }
 0xbd4   :  { %920 = vrot.lane.b32.xlu1 %v1208_v11, %s1393_s4 }
 0xbd5   :  { %v1210_v17 = vpop.eup %1209 }
 0xbd6   :  { %v882_v19 = vadd.f32 1.0, %v1210_v17 }
 0xbd8   :  { %1211 = vrcp.f32 %v882_v19  ;;  %v895_v23 = vand.u32 2147483648, %v882_v19  ;;  %vm889_vm6 = vweird.f32 %v882_v19  ;;  %v893_v31 = vand.u32 2147483647, %v882_v19 }
 0xbda   :  { %v896_v26 = vor.u32 1.1754944e-38, %v895_v23  ;;  %vm894_vm8 = vcmp.eq.f32.partialorder %v893_v31, 8.507059e+37 }
 0xbde   :  { %v1212_v20 = vpop.eup %1211 }
 0xbdf   :  { %v885_v21 = vmul.f32 %v1212_v20, %v882_v19  ;;  %vm890_vm5 = vweird.f32 %v1212_v20 }
 0xbe0   :  { %vm891_vm7 = vmor %vm889_vm6, %vm890_vm5 }
 0xbe1   :  { %v886_v24 = vsub.f32 1.0, %v885_v21 }
 0xbe3   :  { %v887_v12 = vmul.f32 %v1212_v20, %v886_v24 }
 0xbe5   :  { %v888_v18 = vadd.f32 %v1212_v20, %v887_v12 }
 0xbe7   :  { %v892_v25 = vsel %vm891_vm7, %v1212_v20, %v888_v18 }
 0xbe8   :  { %v897_v29 = vsel %vm894_vm8, %v896_v26, %v892_v25 }
 0xbe9   :  { %v918_v33 = vmul.f32 %v916_v32, %v897_v29 }
 0xc46   :  { %v921_v27 = vpop.permute.xlu1 %920 }
 0xc47   :  { %v923_v30 = vmul.f32 %v921_v27, %v897_v29 }
 0xc49   :  { %925 = vrot.lane.b32.xlu2 %v923_v30, %s1393_s4 }
 0xca3   :  { %v926_v34 = vpop.permute.xlu2 %925 }
 0xca4   :  { %v928_v35 = vadd.f32 %v926_v34, %v918_v33 }
 0xca6   :  { %1213 = vtanh.f32 %v928_v35  ;;  %v1027_v8 = vrot.slane %v928_v35, 6 }
 0xca7   :  { %1215 = vpow2.f32 %v1119_v37 }
 0xcac   :  { %v1214_v36 = vpop.eup %1213 }
 0xcad   :  { %931 = vrot.lane.b32.xlu0 %v1214_v36, %s1393_s4  ;;  %v1216_v38 = vpop.eup %1215 }
 0xcae   :  { %v883_v39 = vadd.f32 1.0, %v1216_v38 }
 0xcb0   :  { %1217 = vrcp.f32 %v883_v39  ;;  %v910_v45 = vand.u32 2147483648, %v883_v39  ;;  %vm904_vm10 = vweird.f32 %v883_v39  ;;  %v908_v46 = vand.u32 2147483647, %v883_v39 }
 0xcb2   :  { %v911_v48 = vor.u32 1.1754944e-38, %v910_v45  ;;  %vm909_vm12 = vcmp.eq.f32.partialorder %v908_v46, 8.507059e+37 }
 0xcb6   :  { %v1218_v40 = vpop.eup %1217 }
 0xcb7   :  { %v900_v41 = vmul.f32 %v1218_v40, %v883_v39  ;;  %vm905_vm9 = vweird.f32 %v1218_v40 }
 0xcb8   :  { %vm906_vm11 = vmor %vm904_vm10, %vm905_vm9 }
 0xcb9   :  { %v901_v42 = vsub.f32 1.0, %v900_v41 }
 0xcbb   :  { %v902_v43 = vmul.f32 %v1218_v40, %v901_v42 }
 0xcbd   :  { %v903_v44 = vadd.f32 %v1218_v40, %v902_v43 }
 0xcbf   :  { %v907_v47 = vsel %vm906_vm11, %v1218_v40, %v903_v44 }
 0xcc0   :  { %v912_v49 = vsel %vm909_vm12, %v911_v48, %v907_v47 }
 0xd1f   :  { %v932_v52 = vpop.permute.xlu0 %931 }
 0xd20   :  { %v934_v54 = vmul.f32 %v932_v52, %v912_v49 }
 0xd22   :  { %v936_v55 = vrot.slane %v934_v54, 4 }
 0xd24   :  { %1120 = vmatmul.msk.f32.vlgmr.msra.gmra.mxu0 %vm171_vm1, %v936_v55  ;;  %1121 = vmatmul.msk.f32.vlgmr.msra.gmra.mxu1 %vm171_vm1, %v936_v55 }
 0xda1   :  { %v976_v56 = vpop.f32.mrf.mxu1  ;;  %v956_v61 = vpop.f32.mrf.mxu0 }
 0xda2   :  { %v982_v57 = vrot.slane %v976_v56, 2  ;;  %v981_v51 = vrot.slane %v956_v61, 2 }
 0xda4   :  { %v986_v59 = vadd.f32 %v982_v57, %v1673_v50  ;;  %v985_v22 = vadd.f32 %v981_v51, %v1678_v58 }
 0xda6   :  { %1219 = vtanh.f32 %v986_v59  ;;  %v1122_v53 = vmul.f32 -1.442695, %v985_v22  ;;  %v1123_v15 = vmul.f32 -1.442695, %v986_v59 }
 0xda8   :  { %1221 = vpow2.f32 %v1122_v53 }
 0xdac   :  { %v1220_v60 = vpop.eup %1219 }
 0xdad   :  { %1031 = vrot.lane.b32.xlu1 %v1220_v60, %s1393_s4 }
 0xdae   :  { %v1222_v62 = vpop.eup %1221 }
 0xdaf   :  { %v993_v63 = vadd.f32 1.0, %v1222_v62 }
 0xdb1   :  { %1223 = vrcp.f32 %v993_v63  ;;  %v1006_v50 = vand.u32 2147483648, %v993_v63  ;;  %vm1000_vm13 = vweird.f32 %v993_v63  ;;  %v1004_v0 = vand.u32 2147483647, %v993_v63 }
 0xdb3   :  { %v1007_v2 = vor.u32 1.1754944e-38, %v1006_v50  ;;  %vm1005_vm15 = vcmp.eq.f32.partialorder %v1004_v0, 8.507059e+37 }
 0xdb7   :  { %v1224_v3 = vpop.eup %1223 }
 0xdb8   :  { %v996_v4 = vmul.f32 %v1224_v3, %v993_v63  ;;  %vm1001_vm1 = vweird.f32 %v1224_v3 }
 0xdb9   :  { %vm1002_vm14 = vmor %vm1000_vm13, %vm1001_vm1 }
 0xdba   :  { %v997_v6 = vsub.f32 1.0, %v996_v4 }
 0xdbc   :  { %v998_v10 = vmul.f32 %v1224_v3, %v997_v6 }
 0xdbe   :  { %v999_v28 = vadd.f32 %v1224_v3, %v998_v10 }
 0xdc0   :  { %v1003_v1 = vsel %vm1002_vm14, %v1224_v3, %v999_v28 }
 0xdc1   :  { %v1008_v58 = vsel %vm1005_vm15, %v1007_v2, %v1003_v1 }
 0xdc2   :  { %v1029_v9 = vmul.f32 %v1027_v8, %v1008_v58 }
 0xe1f   :  { %v1032_v5 = vpop.permute.xlu1 %1031 }
 0xe20   :  { %v1034_v7 = vmul.f32 %v1032_v5, %v1008_v58 }
 0xe22   :  { %1036 = vrot.lane.b32.xlu2 %v1034_v7, %s1393_s4 }
 0xe7c   :  { %v1037_v11 = vpop.permute.xlu2 %1036 }
 0xe7d   :  { %v1039_v13 = vadd.f32 %v1037_v11, %v1029_v9 }
 0xe7f   :  { %1225 = vtanh.f32 %v1039_v13  ;;  %1049 = vrot.lane.b32.xlu1 %v1039_v13, %s1393_s4 }
 0xe80   :  { %1227 = vpow2.f32 %v1123_v15 }
 0xe85   :  { %v1226_v14 = vpop.eup %1225 }
 0xe86   :  { %1042 = vrot.lane.b32.xlu0 %v1226_v14, %s1393_s4  ;;  %v1228_v16 = vpop.eup %1227 }
 0xe87   :  { %v994_v17 = vadd.f32 1.0, %v1228_v16 }
 0xe89   :  { %1229 = vrcp.f32 %v994_v17  ;;  %v1021_v23 = vand.u32 2147483648, %v994_v17  ;;  %vm1015_vm3 = vweird.f32 %v994_v17  ;;  %v1019_v31 = vand.u32 2147483647, %v994_v17 }
 0xe8b   :  { %v1022_v26 = vor.u32 1.1754944e-38, %v1021_v23  ;;  %vm1020_vm5 = vcmp.eq.f32.partialorder %v1019_v31, 8.507059e+37 }
 0xe8f   :  { %v1230_v19 = vpop.eup %1229 }
 0xe90   :  { %v1011_v20 = vmul.f32 %v1230_v19, %v994_v17  ;;  %vm1016_vm2 = vweird.f32 %v1230_v19 }
 0xe91   :  { %vm1017_vm4 = vmor %vm1015_vm3, %vm1016_vm2 }
 0xe92   :  { %v1012_v21 = vsub.f32 1.0, %v1011_v20 }
 0xe94   :  { %v1013_v24 = vmul.f32 %v1230_v19, %v1012_v21 }
 0xe96   :  { %v1014_v18 = vadd.f32 %v1230_v19, %v1013_v24 }
 0xe98   :  { %v1018_v25 = vsel %vm1017_vm4, %v1230_v19, %v1014_v18 }
 0xe99   :  { %v1023_v27 = vsel %vm1020_vm5, %v1022_v26, %v1018_v25 }
 0xef1   :  { %v1050_v12 = vpop.permute.xlu1 %1049 }
 0xef2   :  { %1052 = vst.msk [vmem:[#allocation11 - $0x6] sm:$0xc0] %vm1046_vm0, %v1050_v12 }
 0xef3   :  { %1074 = dma.vmem_to_hbm [thread:$0]  %s1070_s25, 32, %s1072_s28, [#allocation12]  }
 0xef8   :  { %v1043_v29 = vpop.permute.xlu0 %1042 }
 0xef9   :  { %v1045_v30 = vmul.f32 %v1043_v29, %v1023_v27 }
 0xefb   :  { %1047 = vst.msk [vmem:[#allocation10 - $0x6] sm:$0xc0] %vm1046_vm0, %v1045_v30 }
 0xefc   :  { %1063 = dma.vmem_to_hbm [thread:$0]  %s1059_s30, 32, %s1061_s7, [#allocation4]  }
 0xefd   :  { %1381 = dma.done.wait [#allocation4], 32  }
 0xefe   :  { %1382 = vsyncadd [#allocation4], 4294967264 }
 0xeff   :  { %1383 = dma.done.wait [#allocation12], 32  }
 0xf00   :  { %1384 = vsyncadd [#allocation12], 4294967264 }
 0xf01   :  { %1083 = vsyncpa [#allocation3], 1 }
 0xf02   :  { %1084 = vsyncpa [#allocation6], 1 }
 0xf03   :  { %1085 = vsyncpa [#allocation9], 1 }
 0xf04   :  { %1086 = vsyncpa [#allocation4], 1 }
 0xf05   :  { %1087 = vsyncpa [#allocation12], 1 }

</bundles_post_ra>
